<compile_context>
chip_gen: v7x
topology: tpu7x:2x2x1
jax: 0.10.0
libtpu: 0.0.40
codegen_flags: <defaults>
</compile_context>

<pallas_src>
import functools
import math

import jax
import jax.numpy as jnp
from jax.experimental import pallas as pl
from jax.experimental.pallas import tpu as pltpu


# --------------------------------------------------------------------------
# Kernels
# --------------------------------------------------------------------------
def _ln_rows_kernel(x_ref, o_ref, *, eps: float):
    """Per-row layernorm: normalize each row of a (tile_rows, hidden) tile."""
    x = x_ref[...].astype(jnp.float32)
    mean = jnp.mean(x, axis=-1, keepdims=True)
    # one-pass biased variance (torch.var(..., unbiased=False))
    var = jnp.mean(x * x, axis=-1, keepdims=True) - mean * mean
    var = jnp.maximum(var, 0.0)  # guard against cancellation
    inv = jax.lax.rsqrt(var + eps)
    o_ref[...] = ((x - mean) * inv).astype(o_ref.dtype)


def _ln_folded_kernel(x_ref, seg_ref, o_ref, *, eps: float):
    """Lane-dense variant: tile is (tile_rows, k*hidden); each hidden-wide
    segment of a physical row is an independent logical row.  Segment mean
    and E[x^2] (broadcast back to every lane of the segment) are computed
    with a block-diagonal (width, width) matmul on the MXU."""
    x = x_ref[...].astype(jnp.float32)          # (T, width)
    m = seg_ref[...]                            # (width, width), 1/hidden on blocks
    mean = jnp.dot(x, m, preferred_element_type=jnp.float32)       # segment mean
    ex2 = jnp.dot(x * x, m, preferred_element_type=jnp.float32)    # segment E[x^2]
    var = jnp.maximum(ex2 - mean * mean, 0.0)
    inv = jax.lax.rsqrt(var + eps)
    o_ref[...] = ((x - mean) * inv).astype(o_ref.dtype)


# --------------------------------------------------------------------------
# Wrapper
# --------------------------------------------------------------------------
def _vmem_capacity_bytes() -> int:
    """Per-core VMEM capacity; conservative fallback if the query fails."""
    try:
        info = pltpu.get_tpu_info()
        cap = getattr(info, "vmem_capacity_bytes", None)
        if cap:
            return int(cap)
    except Exception:
        pass
    return 64 << 20  # v7x-sized conservative default


def layer_normalize(x: jax.Array, eps: float = 1e-5,
                    tile_rows: int | None = None) -> jax.Array:
    """Pallas implementation of LayerNormalize.forward (normalize over dim=-1)."""
    orig_shape = x.shape
    hidden = int(orig_shape[-1])
    rows = int(math.prod(orig_shape[:-1])) if len(orig_shape) > 1 else 1
    itemsize = jnp.dtype(x.dtype).itemsize

    # ---- lane-dense folding for narrow hidden sizes --------------------
    k = 1
    if hidden < 128 and 128 % hidden == 0:
        cand = 128 // hidden
        if rows % cand == 0:
            k = cand
    width = k * hidden          # last-dim width the kernel sees
    rows_f = rows // k          # physical rows the kernel sees
    x2d = x.reshape(rows_f, width)   # free row-major reshape (no copy)

    # ---- generation-aware VMEM budget ----------------------------------
    vmem_cap = _vmem_capacity_bytes()
    vmem_limit = int(min(vmem_cap // 2, 64 << 20))  # 32 MiB on v7x, 64 MiB v5e/v6e

    # ---- tile sizing: ~4 MiB per input block, aligned to packing --------
    if tile_rows is None:
        row_align = 8 if itemsize >= 4 else (16 if itemsize == 2 else 32)
        target_block_bytes = 4 << 20
        tr = max(row_align, target_block_bytes // max(1, width * itemsize))
        tr = max(row_align, (tr // row_align) * row_align)
        # cap: double-buffered in/out (input dtype) + ~5 f32 temps in-kernel
        per_row_bytes = width * (4 * itemsize + 5 * 4)
        cap_tr = int(vmem_limit * 0.8) // per_row_bytes
        cap_tr = max(row_align, (cap_tr // row_align) * row_align)
        tile_rows = int(min(tr, cap_tr))
    if tile_rows >= rows_f:
        tile_rows = rows_f  # single block covers everything (full-dim block is legal)

    grid = (pl.cdiv(rows_f, tile_rows),)  # ragged last block handled by Pallas

    cost = pl.CostEstimate(
        flops=int(5 * rows * hidden + (4 * rows_f * width * width if k > 1 else 0)),
        transcendentals=int(rows),
        bytes_accessed=int(2 * rows * hidden * itemsize),
    )
    cparams = pltpu.CompilerParams(
        dimension_semantics=("parallel",),
        vmem_limit_bytes=vmem_limit,
    )

    if k == 1:
        out = pl.pallas_call(
            functools.partial(_ln_rows_kernel, eps=float(eps)),
            out_shape=jax.ShapeDtypeStruct((rows_f, width), x.dtype),
            grid_spec=pltpu.PrefetchScalarGridSpec(
                num_scalar_prefetch=0,
                grid=grid,
                in_specs=[pl.BlockSpec((tile_rows, width), lambda i: (i, 0))],
                out_specs=pl.BlockSpec((tile_rows, width), lambda i: (i, 0)),
            ),
            compiler_params=cparams,
            cost_estimate=cost,
        )(x2d)
    else:
        # block-diagonal segment-averaging matrix: M[j, l] = 1/hidden if
        # j and l belong to the same hidden-wide segment, else 0.
        lane = jnp.arange(width, dtype=jnp.int32)
        same_seg = (lane[:, None] // hidden) == (lane[None, :] // hidden)
        seg_m = jnp.where(same_seg, jnp.float32(1.0 / hidden), jnp.float32(0.0))

        out = pl.pallas_call(
            functools.partial(_ln_folded_kernel, eps=float(eps)),
            out_shape=jax.ShapeDtypeStruct((rows_f, width), x.dtype),
            grid_spec=pltpu.PrefetchScalarGridSpec(
                num_scalar_prefetch=0,
                grid=grid,
                in_specs=[
                    pl.BlockSpec((tile_rows, width), lambda i: (i, 0)),
                    # constant block index -> stays resident in VMEM, one DMA
                    pl.BlockSpec((width, width), lambda i: (0, 0)),
                ],
                out_specs=pl.BlockSpec((tile_rows, width), lambda i: (i, 0)),
            ),
            compiler_params=cparams,
            cost_estimate=cost,
        )(x2d, seg_m)

    return out.reshape(orig_shape)


# --------------------------------------------------------------------------
# Reference + self-test
# --------------------------------------------------------------------------
def _reference(x, eps=1e-5):
    x32 = x.astype(jnp.float32)
    mean = jnp.mean(x32, axis=-1, keepdims=True)
    var = jnp.mean((x32 - mean) ** 2, axis=-1, keepdims=True)
    return ((x32 - mean) / jnp.sqrt(var + eps)).astype(x.dtype)


if __name__ == "__main__":
    key = jax.random.PRNGKey(0)

    # small shape consistent with the module: (batch=2, seq=8, hidden=32)
    # -> exercises the lane-dense folded (MXU segmented-mean) path.
    x = jax.random.normal(key, (2, 8, 32), dtype=jnp.float32)
    y = jax.block_until_ready(layer_normalize(x, eps=1e-5))
    y_ref = _reference(x, eps=1e-5)
    assert y.shape == x.shape and y.dtype == x.dtype
    assert jnp.allclose(y, y_ref, atol=1e-5, rtol=1e-5), "mismatch (folded path)"

    # wide-hidden smoke test -> exercises the plain per-row reduction path.
    x2 = jax.random.normal(jax.random.PRNGKey(1), (2, 8, 256), dtype=jnp.float32)
    y2 = jax.block_until_ready(layer_normalize(x2, eps=1e-5))
    assert jnp.allclose(y2, _reference(x2, eps=1e-5), atol=1e-5, rtol=1e-5), \
        "mismatch (rows path)"

    print("KERNEL_OK")
</pallas_src>

<mosaic_0001>
module attributes {stable_mosaic.version = 11 : i64} {
  func.func @_ln_folded_kernel(%arg0: i32, %arg1: memref<4x128xf32, #tpu.memory_space<vmem>>, %arg2: memref<128x128xf32, #tpu.memory_space<vmem>>, %arg3: memref<4x128xf32, #tpu.memory_space<vmem>>) attributes {dimension_semantics = [#tpu.dimension_semantics<parallel>], iteration_bounds = array<i64: 1>, scalar_prefetch = 0 : i64, scratch_operands = 0 : i64, tpu.core_type = #tpu.core_type<tc>, window_params = [{transform_indices = @transform_0, window_bounds = array<i64: 4, 128>}, {pipeline_mode = #tpu.pipeline_mode<synchronous>, transform_indices = @transform_1, window_bounds = array<i64: 128, 128>}, {transform_indices = @transform_2, window_bounds = array<i64: 4, 128>}]} {
    %c0 = arith.constant 0 : index
    %c0_0 = arith.constant 0 : index
    %0 = vector.load %arg1[%c0, %c0_0] : memref<4x128xf32, #tpu.memory_space<vmem>>, vector<4x128xf32>
    %c0_1 = arith.constant 0 : index
    %c0_2 = arith.constant 0 : index
    %1 = vector.load %arg2[%c0_1, %c0_2] : memref<128x128xf32, #tpu.memory_space<vmem>>, vector<128x128xf32>
    %cst = arith.constant dense<0.000000e+00> : vector<4x128xf32>
    %2 = tpu.matmul %0, %1, %cst {dimension_numbers = #tpu.dot_dimension_numbers<[1], [0], [0], [1], [0, 0, 1, 1], [], []>} : vector<4x128xf32>, vector<128x128xf32>, vector<4x128xf32> -> vector<4x128xf32>
    %3 = arith.mulf %0, %0 : vector<4x128xf32>
    %cst_3 = arith.constant dense<0.000000e+00> : vector<4x128xf32>
    %4 = tpu.matmul %3, %1, %cst_3 {dimension_numbers = #tpu.dot_dimension_numbers<[1], [0], [0], [1], [0, 0, 1, 1], [], []>} : vector<4x128xf32>, vector<128x128xf32>, vector<4x128xf32> -> vector<4x128xf32>
    %5 = arith.mulf %2, %2 : vector<4x128xf32>
    %6 = arith.subf %4, %5 : vector<4x128xf32>
    %cst_4 = arith.constant 0.000000e+00 : f32
    %7 = vector.broadcast %cst_4 : f32 to vector<4x128xf32>
    %8 = arith.maximumf %6, %7 : vector<4x128xf32>
    %cst_5 = arith.constant 9.99999974E-6 : f32
    %9 = vector.broadcast %cst_5 : f32 to vector<4x128xf32>
    %10 = arith.addf %8, %9 : vector<4x128xf32>
    %11 = math.rsqrt %10 : vector<4x128xf32>
    %12 = arith.subf %0, %2 : vector<4x128xf32>
    %13 = arith.mulf %12, %11 : vector<4x128xf32>
    %c0_6 = arith.constant 0 : index
    %c0_7 = arith.constant 0 : index
    %14 = vector.load %arg3[%c0_6, %c0_7] : memref<4x128xf32, #tpu.memory_space<vmem>>, vector<4x128xf32>
    tpu.vector_store %arg3[%c0_6, %c0_7], %13 {strides = array<i32>} : memref<4x128xf32, #tpu.memory_space<vmem>>, vector<4x128xf32>,
    return
  }
  func.func @transform_0(%arg0: i32) -> (i32, i32) {
    %c0_i32 = arith.constant 0 : i32
    %c0_i32_0 = arith.constant 0 : i32
    return %arg0, %c0_i32 : i32, i32
  }
  func.func @transform_1(%arg0: i32) -> (i32, i32) {
    %c0_i32 = arith.constant 0 : i32
    %c0_i32_0 = arith.constant 0 : i32
    %c0_i32_1 = arith.constant 0 : i32
    return %c0_i32, %c0_i32_0 : i32, i32
  }
  func.func @transform_2(%arg0: i32) -> (i32, i32) {
    %c0_i32 = arith.constant 0 : i32
    %c0_i32_0 = arith.constant 0 : i32
    return %arg0, %c0_i32 : i32, i32
  }
}

</mosaic_0001>

<bundles_post_ra>
// kernel: tpu_custom_call.1
= control target key start
LH: loop header
LB: loop body
LE: loop exit
PB: predicated region body
PF: predicated region fallthrough
CT: control target
= control target key end

     0   :  { %7 = vsyncpa [#allocation3], 0  ;;  %s520_s0 = inlined_call_operand.hbm [shape: f32[4,128], index: 0, kind: input, shape index: {}]   ;;  %s521_s1 = inlined_call_operand.hbm [shape: f32[128,128], index: 1, kind: input, shape index: {}]   ;;  %s522_s2 = inlined_call_operand.hbm [shape: f32[4,128], index: 2, kind: output, shape index: {}]  }
   0x1   :  { %8 = vsyncpa [#allocation6], 0 }
   0x2   :  { %9 = vsyncpa [#allocation4], 0  ;;  %s454_s9 = smov [#allocation2]   ;;  %s455_s11 = smov [#allocation5]  }
   0x3   :  { %s16_s10 = sshll.u32 %s454_s9, 4  ;;  %s25_s12 = sshll.u32 %s455_s11, 4  ;;  %s17_s10 = int_to_ptr.vmem [resolvable:$true] %s16_s10  ;;  %s477_s12 = int_to_ptr.vmem [resolvable:$true] %s25_s12 }
   0x4   :  { %s382_s15 = scalar_lea.hbm %s520_s0, 64 }
   0x5   :  { %p383_p0 = scmp.ne.s32.totalorder %s520_s0, %s382_s15  ;;  %p386_p1 = scmp.lt.u32.totalorder %s382_s15, %s520_s0 }
   0x7   :  { %p388_p2 = pnand %p386_p1, %p383_p0 }
   0x9   :  { %391 = shalt.err (!%p388_p2)
}
   0xa   :  { %s392_s20 = scalar_lea.vmem %s17_s10, 64  ;;  %p397_p4 = scmp.lt.s32.totalorder %s17_s10, %s17_s10 }
   0xb   :  { %p393_p3 = scmp.ne.s32.totalorder %s17_s10, %s392_s20  ;;  %p398_p5 = scmp.lt.s32.totalorder %s392_s20, %s392_s20 }
   0xd   :  { %p399_p6 = por %p398_p5, %p397_p4 }
   0xf   :  { %p400_p7 = pnand %p399_p6, %p393_p3 }
  0x11   :  { %403 = shalt.err (!%p400_p7)
}
  0x12   :  { %19 = dma.hbm_to_vmem [thread:$0]  %s520_s0, 64, %s17_s10, [#allocation3]  }
  0x13   :  { %s404_s25 = scalar_lea.hbm %s521_s1, 2048 }
  0x14   :  { %p405_p8 = scmp.ne.s32.totalorder %s521_s1, %s404_s25  ;;  %p408_p9 = scmp.lt.u32.totalorder %s404_s25, %s521_s1 }
  0x16   :  { %p410_p10 = pnand %p408_p9, %p405_p8 }
  0x18   :  { %413 = shalt.err (!%p410_p10)
}
  0x19   :  { %s414_s30 = scalar_lea.vmem %s477_s12, 2048  ;;  %p419_p12 = scmp.lt.s32.totalorder %s477_s12, %s477_s12 }
  0x1a   :  { %p415_p11 = scmp.ne.s32.totalorder %s477_s12, %s414_s30  ;;  %p420_p13 = scmp.lt.s32.totalorder %s414_s30, %s414_s30 }
  0x1c   :  { %p421_p0 = por %p420_p13, %p419_p12 }
  0x1e   :  { %p422_p1 = pnand %p421_p0, %p415_p11 }
  0x20   :  { %425 = shalt.err (!%p422_p1)
}
  0x21   :  { %s456_s0 = smov 128   ;;  %s457_s3 = smov 8  }
  0x22   :  { %31 = dma.hbm_to_vmem [thread:$0]  %s521_s1, 2048, %s477_s12, [#allocation6], %s456_s0, %s456_s0, %s457_s3  }
  0x23   :  { %448 = dma.done.wait [#allocation3], 64  }
  0x24   :  { %449 = vsyncadd [#allocation3], 4294967232 }
  0x25   :  { %450 = dma.done.wait [#allocation6], 2048  }
  0x26   :  { %451 = vsyncadd [#allocation6], 4294965248  ;;  %v458_v0 = vmov 0.0|0.0   ;;  %vm459_vm0 = vmmov 0   ;;  %v460_v1 = vmov 0.0   ;;  %v39_v2 = vld [vmem:[#allocation5] sm:$0xff] }
  0x27   :  { %324 = vmatprep.subr.bf16.mxu0 %v458_v0  ;;  %348 = vmatprep.subr.bf16.mxu1 %v458_v0  ;;  %v40_v3 = vld [vmem:[#allocation5 + $0x8] sm:$0xff]  ;;  %v41_v4 = vld [vmem:[#allocation5 + $0x10] sm:$0xff]  ;;  %v42_v6 = vld [vmem:[#allocation5 + $0x18] sm:$0xff]  ;;  %s461_s1 = smov [#allocation7]  }
  0x28   :  { %286 = vmatprep.mubr.msk.f32.mxu0 %vm459_vm0, %v460_v1  ;;  %321 = vmatprep.mubr.msk.f32.mxu1 %vm459_vm0, %v460_v1  ;;  %v325_v5 = vpack.c.bf16 %v40_v3, %v39_v2  ;;  %v328_v7 = vpack.c.bf16 %v42_v6, %v41_v4  ;;  %v43_v8 = vld [vmem:[#allocation5 + $0x20] sm:$0xff]  ;;  %v44_v9 = vld [vmem:[#allocation5 + $0x28] sm:$0xff]  ;;  %v45_v11 = vld [vmem:[#allocation5 + $0x30] sm:$0xff]  ;;  %s210_s6 = sshll.u32 %s461_s1, 4  ;;  %s211_s6 = int_to_ptr.vmem [resolvable:$true] %s210_s6 }
  0x29   :  { %v331_v10 = vpack.c.bf16 %v44_v9, %v43_v8  ;;  %v46_v12 = vld [vmem:[#allocation5 + $0x38] sm:$0xff]  ;;  %v47_v14 = vld [vmem:[#allocation5 + $0x40] sm:$0xff]  ;;  %v48_v15 = vld [vmem:[#allocation5 + $0x48] sm:$0xff]  ;;  %s426_s7 = scalar_lea.vmem %s211_s6, 64  ;;  %p431_p3 = scmp.lt.s32.totalorder %s211_s6, %s211_s6 }
  0x2a   :  { %326 = vmatpush3.bf16.msra.mxu0 %v325_v5  ;;  %350 = vmatpush3.bf16.msra.mxu1 %v325_v5  ;;  %v334_v13 = vpack.c.bf16 %v46_v12, %v45_v11  ;;  %v337_v16 = vpack.c.bf16 %v48_v15, %v47_v14  ;;  %v49_v17 = vld [vmem:[#allocation5 + $0x50] sm:$0xff]  ;;  %v50_v18 = vld [vmem:[#allocation5 + $0x58] sm:$0xff]  ;;  %v51_v20 = vld [vmem:[#allocation5 + $0x60] sm:$0xff]  ;;  %p427_p2 = scmp.ne.s32.totalorder %s211_s6, %s426_s7  ;;  %p432_p4 = scmp.lt.s32.totalorder %s426_s7, %s426_s7 }
  0x2b   :  { %327 = vmatprep.subr.bf16.mxu0 %v458_v0  ;;  %351 = vmatprep.subr.bf16.mxu1 %v458_v0  ;;  %v340_v19 = vpack.c.bf16 %v50_v18, %v49_v17  ;;  %v52_v21 = vld [vmem:[#allocation5 + $0x68] sm:$0xff]  ;;  %v53_v23 = vld [vmem:[#allocation5 + $0x70] sm:$0xff]  ;;  %v54_v24 = vld [vmem:[#allocation5 + $0x78] sm:$0xff] }
  0x2c   :  { %v343_v22 = vpack.c.bf16 %v52_v21, %v51_v20  ;;  %v346_v25 = vpack.c.bf16 %v54_v24, %v53_v23  ;;  %v38_v26 = vld [vmem:[#allocation2] sm:$0xf]  ;;  %p433_p5 = por %p432_p4, %p431_p3 }
  0x2d   :  { %v125_v27 = vmul.f32 %v38_v26, %v38_v26 }
  0x2e   :  { %329 = vmatpush3.bf16.msra.mxu0 %v328_v7  ;;  %353 = vmatpush3.bf16.msra.mxu1 %v328_v7  ;;  %p434_p6 = pnand %p433_p5, %p427_p2 }
  0x2f   :  { %330 = vmatprep.subr.bf16.mxu0 %v458_v0  ;;  %354 = vmatprep.subr.bf16.mxu1 %v458_v0 }
  0x32   :  { %332 = vmatpush3.bf16.msra.mxu0 %v331_v10  ;;  %356 = vmatpush3.bf16.msra.mxu1 %v331_v10 }
  0x33   :  { %333 = vmatprep.subr.bf16.mxu0 %v458_v0  ;;  %357 = vmatprep.subr.bf16.mxu1 %v458_v0 }
  0x36   :  { %335 = vmatpush3.bf16.msra.mxu0 %v334_v13  ;;  %359 = vmatpush3.bf16.msra.mxu1 %v334_v13 }
  0x37   :  { %336 = vmatprep.subr.bf16.mxu0 %v458_v0  ;;  %360 = vmatprep.subr.bf16.mxu1 %v458_v0 }
  0x3a   :  { %338 = vmatpush3.bf16.msra.mxu0 %v337_v16  ;;  %362 = vmatpush3.bf16.msra.mxu1 %v337_v16 }
  0x3b   :  { %339 = vmatprep.subr.bf16.mxu0 %v458_v0  ;;  %363 = vmatprep.subr.bf16.mxu1 %v458_v0 }
  0x3e   :  { %341 = vmatpush3.bf16.msra.mxu0 %v340_v19  ;;  %365 = vmatpush3.bf16.msra.mxu1 %v340_v19 }
  0x3f   :  { %342 = vmatprep.subr.bf16.mxu0 %v458_v0  ;;  %366 = vmatprep.subr.bf16.mxu1 %v458_v0 }
  0x42   :  { %344 = vmatpush3.bf16.msra.mxu0 %v343_v22  ;;  %368 = vmatpush3.bf16.msra.mxu1 %v343_v22 }
  0x43   :  { %345 = vmatprep.subr.bf16.mxu0 %v458_v0  ;;  %369 = vmatprep.subr.bf16.mxu1 %v458_v0 }
  0x46   :  { %347 = vmatpush3.bf16.msra.mxu0 %v346_v25  ;;  %371 = vmatpush3.bf16.msra.mxu1 %v346_v25 }
  0x49   :  { %287 = vmatmul.mubr.f32.vlgmr.msra.gmra.mrb[0].mxu0 %v38_v26  ;;  %322 = vmatmul.mubr.f32.vlgmr.msra.gmra.mrb[0].mxu1 %v125_v27 }
 0x11c   :  { %v121_v28 = vpop.f32.mrb[0].mxu0  ;;  %v192_v29 = vpop.f32.mrb[0].mxu1 }
 0x11d   :  { %v196_v30 = vmul.f32 %v121_v28, %v121_v28  ;;  %v288_v31 = vpop.f32.mrb[1].mxu0  ;;  %v323_v32 = vpop.f32.mrb[1].mxu1  ;;  %v201_v36 = vsub.f32 %v38_v26, %v121_v28 }
 0x11f   :  { %v197_v33 = vsub.f32 %v192_v29, %v196_v30 }
 0x121   :  { %v198_v34 = vmax.f32 %v197_v33, 0.0 }
 0x123   :  { %v199_v35 = vadd.f32 1e-05, %v198_v34 }
 0x125   :  { %380 = vrsqrt.f32 %v199_v35 }
 0x12f   :  { %v381_v37 = vpop.eup %380 }
 0x130   :  { %v202_v38 = vmul.f32 %v381_v37, %v201_v36 }
 0x132   :  { %203 = vst [vmem:[#allocation7] sm:$0xf] %v202_v38 }
 0x133   :  { %437 = shalt.err (!%p434_p6)
}
 0x134   :  { %s438_s10 = scalar_lea.hbm %s522_s2, 64 }
 0x135   :  { %p439_p7 = scmp.ne.s32.totalorder %s522_s2, %s438_s10  ;;  %p442_p8 = scmp.lt.u32.totalorder %s438_s10, %s522_s2 }
 0x137   :  { %p444_p9 = pnand %p442_p8, %p439_p7 }
 0x139   :  { %447 = shalt.err (!%p444_p9)
}
 0x13a   :  { %213 = dma.vmem_to_hbm [thread:$0]  %s211_s6, 64, %s522_s2, [#allocation4]  }
 0x13b   :  { %452 = dma.done.wait [#allocation4], 64  }
 0x13c   :  { %453 = vsyncadd [#allocation4], 4294967232 }
 0x13d   :  { %217 = vsyncpa [#allocation3], 1 }
 0x13e   :  { %218 = vsyncpa [#allocation6], 1 }
 0x13f   :  { %219 = vsyncpa [#allocation4], 1 }

</bundles_post_ra>
